<compile_context>
chip_gen: v7x
topology: tpu7x:2x2x1
jax: 0.10.0
libtpu: 0.0.40
codegen_flags: <defaults>
</compile_context>

<pallas_src>
import functools

import jax
import jax.numpy as jnp
from jax import lax
from jax.experimental import pallas as pl
from jax.experimental.pallas import tpu as pltpu

LANE = 128
SUBLANES = 8
BLOCK_ROWS_DEFAULT = 4096   # 4096 x 128 f32 = 2 MiB per input block
MAX_CORES = 2               # leading "parallel" axis (v7x megacore); harmless on 1-TC chips


def _tversky_partial_kernel(x_ref, t_ref, out_ref, acc_xt, acc_x, acc_t, *,
                            rows, block_rows, total_steps, steps_per_core,
                            num_cores):
    c = pl.program_id(0)
    i = pl.program_id(1)

    @pl.when(i == 0)
    def _():
        acc_xt[...] = jnp.zeros_like(acc_xt)
        acc_x[...] = jnp.zeros_like(acc_x)
        acc_t[...] = jnp.zeros_like(acc_t)

    x = x_ref[...].astype(jnp.float32)
    t = t_ref[...].astype(jnp.float32)

    # Mask rows that fall past the real array (ragged last block) or belong to
    # a clamped duplicate block (grid over-coverage).  Statically skipped when
    # the grid covers the input exactly.
    if (rows % block_rows != 0) or (num_cores * steps_per_core != total_steps):
        logical_block = c * steps_per_core + i
        valid_rows = rows - logical_block * block_rows  # may be <= 0
        row_ids = lax.broadcasted_iota(jnp.int32, (block_rows, LANE), 0)
        keep = row_ids < valid_rows
        x = jnp.where(keep, x, 0.0)
        t = jnp.where(keep, t, 0.0)

    # Hot loop: one multiply per element + vreg-add accumulation (VALU only).
    xr = x.reshape(block_rows // SUBLANES, SUBLANES, LANE)
    tr = t.reshape(block_rows // SUBLANES, SUBLANES, LANE)
    acc_xt[...] += jnp.sum(xr * tr, axis=0)
    acc_x[...] += jnp.sum(xr, axis=0)
    acc_t[...] += jnp.sum(tr, axis=0)

    @pl.when(i == pl.num_programs(1) - 1)
    def _():
        out_ref[0, 0] = acc_xt[...]
        out_ref[0, 1] = acc_x[...]
        out_ref[0, 2] = acc_t[...]


def tversky_loss(inputs, targets, alpha=0.6, beta=0.4):
    assert inputs.shape == targets.shape
    n = inputs.size

    flat_x = inputs.reshape(-1)
    flat_t = targets.reshape(-1)

    pad_unit = SUBLANES * LANE
    n_pad = (-n) % pad_unit
    if n_pad:
        # TODO(synk): tail pad costs one extra copy when numel % 1024 != 0; a
        # fully pad-free path would need in-kernel lane masking of the final
        # partial row.
        flat_x = jnp.pad(flat_x, (0, n_pad))
        flat_t = jnp.pad(flat_t, (0, n_pad))

    rows = (n + n_pad) // LANE                      # multiple of 8
    x2 = flat_x.reshape(rows, LANE)
    t2 = flat_t.reshape(rows, LANE)

    block_rows = min(BLOCK_ROWS_DEFAULT, rows)      # multiple of 8, <= rows
    total_steps = pl.cdiv(rows, block_rows)
    num_cores = max(1, min(MAX_CORES, total_steps))  # no redundant work on tiny inputs
    steps_per_core = pl.cdiv(total_steps, num_cores)

    def in_map(c, i):
        # Clamp so a duplicate trailing block never DMAs out of bounds; its
        # contribution is zeroed by the in-kernel mask.
        return (jnp.minimum(c * steps_per_core + i, total_steps - 1), 0)

    kernel = functools.partial(
        _tversky_partial_kernel,
        rows=rows, block_rows=block_rows,
        total_steps=total_steps, steps_per_core=steps_per_core,
        num_cores=num_cores)

    partials = pl.pallas_call(
        kernel,
        out_shape=jax.ShapeDtypeStruct((num_cores, 3, SUBLANES, LANE), jnp.float32),
        grid_spec=pltpu.PrefetchScalarGridSpec(
            num_scalar_prefetch=0,
            grid=(num_cores, steps_per_core),
            in_specs=[
                pl.BlockSpec((block_rows, LANE), in_map),
                pl.BlockSpec((block_rows, LANE), in_map),
            ],
            out_specs=pl.BlockSpec((1, 3, SUBLANES, LANE),
                                   lambda c, i: (c, 0, 0, 0)),
            scratch_shapes=[pltpu.VMEM((SUBLANES, LANE), jnp.float32)] * 3,
        ),
        compiler_params=pltpu.CompilerParams(
            dimension_semantics=("parallel", "arbitrary"),
        ),
    )(x2, t2)

    # Tiny epilogue reduce + Tversky math in plain JAX.
    sums = jnp.sum(partials, axis=(0, 2, 3))        # (3,)
    tp, sum_x, sum_t = sums[0], sums[1], sums[2]
    fp = sum_x - tp
    fn = sum_t - tp
    tversky_index = tp / (tp + alpha * fn + beta * fp + 1e-08)
    return 1.0 - tversky_index


if __name__ == "__main__":
    key = jax.random.PRNGKey(0)
    k1, k2 = jax.random.split(key)
    # Segmentation-style loss inputs: (B, C, H, W)
    shape = (2, 4, 16, 16)
    inputs = jax.nn.sigmoid(jax.random.normal(k1, shape, dtype=jnp.float32))
    targets = (jax.random.uniform(k2, shape) > 0.5).astype(jnp.float32)

    loss = tversky_loss(inputs, targets)
    jax.block_until_ready(loss)

    # Pure-JAX reference (matches the PyTorch module's forward).
    tp = jnp.sum(inputs * targets)
    fp = jnp.sum(inputs * (1.0 - targets))
    fn = jnp.sum((1.0 - inputs) * targets)
    ref = 1.0 - tp / (tp + 0.6 * fn + 0.4 * fp + 1e-08)
    assert jnp.allclose(loss, ref, rtol=1e-5, atol=1e-6), (loss, ref)

    print("KERNEL_OK")
</pallas_src>

<mosaic_0001>
module attributes {stable_mosaic.version = 11 : i64} {
  func.func @_tversky_partial_kernel(%arg0: i32, %arg1: i32, %arg2: memref<16x128xf32, #tpu.memory_space<vmem>>, %arg3: memref<16x128xf32, #tpu.memory_space<vmem>>, %arg4: memref<1x3x8x128xf32, #tpu.memory_space<vmem>>, %arg5: memref<8x128xf32, #tpu.memory_space<vmem>>, %arg6: memref<8x128xf32, #tpu.memory_space<vmem>>, %arg7: memref<8x128xf32, #tpu.memory_space<vmem>>) attributes {dimension_semantics = [#tpu.dimension_semantics<parallel>, #tpu.dimension_semantics<arbitrary>], iteration_bounds = array<i64: 1, 1>, scalar_prefetch = 0 : i64, scratch_operands = 3 : i64, tpu.core_type = #tpu.core_type<tc>, window_params = [{transform_indices = @transform_0, window_bounds = array<i64: 16, 128>}, {transform_indices = @transform_1, window_bounds = array<i64: 16, 128>}, {transform_indices = @transform_2, window_bounds = array<i64: 1, 3, 8, 128>}]} {
    %c0_i32 = arith.constant 0 : i32
    %0 = arith.cmpi eq, %arg1, %c0_i32 : i32
    %1 = arith.extui %0 : i1 to i32
    %c0_i32_0 = arith.constant 0 : i32
    %2 = arith.cmpi ne, %1, %c0_i32_0 : i32
    scf.if %2 {
      %cst_20 = arith.constant 0.000000e+00 : f32
      %23 = vector.broadcast %cst_20 : f32 to vector<8x128xf32>
      %c0_21 = arith.constant 0 : index
      %c0_22 = arith.constant 0 : index
      %24 = vector.load %arg5[%c0_21, %c0_22] : memref<8x128xf32, #tpu.memory_space<vmem>>, vector<8x128xf32>
      tpu.vector_store %arg5[%c0_21, %c0_22], %23 {strides = array<i32>} : memref<8x128xf32, #tpu.memory_space<vmem>>, vector<8x128xf32>,
      %cst_23 = arith.constant 0.000000e+00 : f32
      %25 = vector.broadcast %cst_23 : f32 to vector<8x128xf32>
      %c0_24 = arith.constant 0 : index
      %c0_25 = arith.constant 0 : index
      %26 = vector.load %arg6[%c0_24, %c0_25] : memref<8x128xf32, #tpu.memory_space<vmem>>, vector<8x128xf32>
      tpu.vector_store %arg6[%c0_24, %c0_25], %25 {strides = array<i32>} : memref<8x128xf32, #tpu.memory_space<vmem>>, vector<8x128xf32>,
      %cst_26 = arith.constant 0.000000e+00 : f32
      %27 = vector.broadcast %cst_26 : f32 to vector<8x128xf32>
      %c0_27 = arith.constant 0 : index
      %c0_28 = arith.constant 0 : index
      %28 = vector.load %arg7[%c0_27, %c0_28] : memref<8x128xf32, #tpu.memory_space<vmem>>, vector<8x128xf32>
      tpu.vector_store %arg7[%c0_27, %c0_28], %27 {strides = array<i32>} : memref<8x128xf32, #tpu.memory_space<vmem>>, vector<8x128xf32>,
    } else {
    }
    %c0 = arith.constant 0 : index
    %c0_1 = arith.constant 0 : index
    %3 = vector.load %arg2[%c0, %c0_1] : memref<16x128xf32, #tpu.memory_space<vmem>>, vector<16x128xf32>
    %c0_2 = arith.constant 0 : index
    %c0_3 = arith.constant 0 : index
    %4 = vector.load %arg3[%c0_2, %c0_3] : memref<16x128xf32, #tpu.memory_space<vmem>>, vector<16x128xf32>
    %5 = vector.shape_cast %3 : vector<16x128xf32> to vector<2x8x128xf32>
    %6 = vector.shape_cast %4 : vector<16x128xf32> to vector<2x8x128xf32>
    %c0_4 = arith.constant 0 : index
    %c0_5 = arith.constant 0 : index
    %7 = vector.load %arg5[%c0_4, %c0_5] : memref<8x128xf32, #tpu.memory_space<vmem>>, vector<8x128xf32>
    %8 = arith.mulf %5, %6 : vector<2x8x128xf32>
    %cst = arith.constant dense<0.000000e+00> : vector<8x128xf32>
    %9 = vector.multi_reduction <add>, %8, %cst [0] : vector<2x8x128xf32> to vector<8x128xf32>
    %10 = arith.addf %7, %9 : vector<8x128xf32>
    %c0_6 = arith.constant 0 : index
    %c0_7 = arith.constant 0 : index
    %11 = vector.load %arg5[%c0_6, %c0_7] : memref<8x128xf32, #tpu.memory_space<vmem>>, vector<8x128xf32>
    tpu.vector_store %arg5[%c0_6, %c0_7], %10 {strides = array<i32>} : memref<8x128xf32, #tpu.memory_space<vmem>>, vector<8x128xf32>,
    %c0_8 = arith.constant 0 : index
    %c0_9 = arith.constant 0 : index
    %12 = vector.load %arg6[%c0_8, %c0_9] : memref<8x128xf32, #tpu.memory_space<vmem>>, vector<8x128xf32>
    %cst_10 = arith.constant dense<0.000000e+00> : vector<8x128xf32>
    %13 = vector.multi_reduction <add>, %5, %cst_10 [0] : vector<2x8x128xf32> to vector<8x128xf32>
    %14 = arith.addf %12, %13 : vector<8x128xf32>
    %c0_11 = arith.constant 0 : index
    %c0_12 = arith.constant 0 : index
    %15 = vector.load %arg6[%c0_11, %c0_12] : memref<8x128xf32, #tpu.memory_space<vmem>>, vector<8x128xf32>
    tpu.vector_store %arg6[%c0_11, %c0_12], %14 {strides = array<i32>} : memref<8x128xf32, #tpu.memory_space<vmem>>, vector<8x128xf32>,
    %c0_13 = arith.constant 0 : index
    %c0_14 = arith.constant 0 : index
    %16 = vector.load %arg7[%c0_13, %c0_14] : memref<8x128xf32, #tpu.memory_space<vmem>>, vector<8x128xf32>
    %cst_15 = arith.constant dense<0.000000e+00> : vector<8x128xf32>
    %17 = vector.multi_reduction <add>, %6, %cst_15 [0] : vector<2x8x128xf32> to vector<8x128xf32>
    %18 = arith.addf %16, %17 : vector<8x128xf32>
    %c0_16 = arith.constant 0 : index
    %c0_17 = arith.constant 0 : index
    %19 = vector.load %arg7[%c0_16, %c0_17] : memref<8x128xf32, #tpu.memory_space<vmem>>, vector<8x128xf32>
    tpu.vector_store %arg7[%c0_16, %c0_17], %18 {strides = array<i32>} : memref<8x128xf32, #tpu.memory_space<vmem>>, vector<8x128xf32>,
    %c0_i32_18 = arith.constant 0 : i32
    %20 = arith.cmpi eq, %arg1, %c0_i32_18 : i32
    %21 = arith.extui %20 : i1 to i32
    %c0_i32_19 = arith.constant 0 : i32
    %22 = arith.cmpi ne, %21, %c0_i32_19 : i32
    scf.if %22 {
      %c0_20 = arith.constant 0 : index
      %c0_21 = arith.constant 0 : index
      %23 = vector.load %arg5[%c0_20, %c0_21] : memref<8x128xf32, #tpu.memory_space<vmem>>, vector<8x128xf32>
      %c0_22 = arith.constant 0 : index
      %c0_23 = arith.constant 0 : index
      %c0_24 = arith.constant 0 : index
      %c0_25 = arith.constant 0 : index
      %24 = vector.load %arg4[%c0_22, %c0_23, %c0_24, %c0_25] : memref<1x3x8x128xf32, #tpu.memory_space<vmem>>, vector<1x1x8x128xf32>
      %25 = vector.shape_cast %24 : vector<1x1x8x128xf32> to vector<8x128xf32>
      %26 = vector.shape_cast %23 : vector<8x128xf32> to vector<1x1x8x128xf32>
      tpu.vector_store %arg4[%c0_22, %c0_23, %c0_24, %c0_25], %26 {strides = array<i32>} : memref<1x3x8x128xf32, #tpu.memory_space<vmem>>, vector<1x1x8x128xf32>,
      %c0_26 = arith.constant 0 : index
      %c0_27 = arith.constant 0 : index
      %27 = vector.load %arg6[%c0_26, %c0_27] : memref<8x128xf32, #tpu.memory_space<vmem>>, vector<8x128xf32>
      %c0_28 = arith.constant 0 : index
      %c1 = arith.constant 1 : index
      %c0_29 = arith.constant 0 : index
      %c0_30 = arith.constant 0 : index
      %28 = vector.load %arg4[%c0_28, %c1, %c0_29, %c0_30] : memref<1x3x8x128xf32, #tpu.memory_space<vmem>>, vector<1x1x8x128xf32>
      %29 = vector.shape_cast %28 : vector<1x1x8x128xf32> to vector<8x128xf32>
      %30 = vector.shape_cast %27 : vector<8x128xf32> to vector<1x1x8x128xf32>
      tpu.vector_store %arg4[%c0_28, %c1, %c0_29, %c0_30], %30 {strides = array<i32>} : memref<1x3x8x128xf32, #tpu.memory_space<vmem>>, vector<1x1x8x128xf32>,
      %c0_31 = arith.constant 0 : index
      %c0_32 = arith.constant 0 : index
      %31 = vector.load %arg7[%c0_31, %c0_32] : memref<8x128xf32, #tpu.memory_space<vmem>>, vector<8x128xf32>
      %c0_33 = arith.constant 0 : index
      %c2 = arith.constant 2 : index
      %c0_34 = arith.constant 0 : index
      %c0_35 = arith.constant 0 : index
      %32 = vector.load %arg4[%c0_33, %c2, %c0_34, %c0_35] : memref<1x3x8x128xf32, #tpu.memory_space<vmem>>, vector<1x1x8x128xf32>
      %33 = vector.shape_cast %32 : vector<1x1x8x128xf32> to vector<8x128xf32>
      %34 = vector.shape_cast %31 : vector<8x128xf32> to vector<1x1x8x128xf32>
      tpu.vector_store %arg4[%c0_33, %c2, %c0_34, %c0_35], %34 {strides = array<i32>} : memref<1x3x8x128xf32, #tpu.memory_space<vmem>>, vector<1x1x8x128xf32>,
    } else {
    }
    return
  }
  func.func @transform_0(%arg0: i32, %arg1: i32) -> (i32, i32) {
    %c1_i32 = arith.constant 1 : i32
    %0 = arith.muli %arg0, %c1_i32 : i32
    %1 = arith.addi %0, %arg1 : i32
    %c0_i32 = arith.constant 0 : i32
    %2 = arith.minsi %1, %c0_i32 : i32
    %c0_i32_0 = arith.constant 0 : i32
    %c0_i32_1 = arith.constant 0 : i32
    return %2, %c0_i32_0 : i32, i32
  }
  func.func @transform_1(%arg0: i32, %arg1: i32) -> (i32, i32) {
    %c1_i32 = arith.constant 1 : i32
    %0 = arith.muli %arg0, %c1_i32 : i32
    %1 = arith.addi %0, %arg1 : i32
    %c0_i32 = arith.constant 0 : i32
    %2 = arith.minsi %1, %c0_i32 : i32
    %c0_i32_0 = arith.constant 0 : i32
    %c0_i32_1 = arith.constant 0 : i32
    return %2, %c0_i32_0 : i32, i32
  }
  func.func @transform_2(%arg0: i32, %arg1: i32) -> (i32, i32, i32, i32) {
    %c0_i32 = arith.constant 0 : i32
    %c0_i32_0 = arith.constant 0 : i32
    %c0_i32_1 = arith.constant 0 : i32
    %c0_i32_2 = arith.constant 0 : i32
    return %arg0, %c0_i32, %c0_i32_0, %c0_i32_1 : i32, i32, i32, i32
  }
}

</mosaic_0001>

<bundles_post_ra>
// kernel: tpu_custom_call.1
= control target key start
LH: loop header
LB: loop body
LE: loop exit
PB: predicated region body
PF: predicated region fallthrough
CT: control target
= control target key end

     0   :  { %7 = vsyncpa [#allocation6], 0  ;;  %s260_s0 = inlined_call_operand.hbm [shape: f32[16,128], index: 0, kind: input, shape index: {}]   ;;  %s261_s1 = inlined_call_operand.hbm [shape: f32[16,128], index: 1, kind: input, shape index: {}]   ;;  %s262_s2 = inlined_call_operand.hbm [shape: f32[1,3,8,128], index: 2, kind: output, shape index: {}]  }
   0x1   :  { %8 = vsyncpa [#allocation9], 0 }
   0x2   :  { %9 = vsyncpa [#allocation7], 0  ;;  %s195_s9 = smov [#allocation5]   ;;  %s123_s13 = scalar_lea.hbm %s260_s0, 256 }
   0x3   :  { %s21_s10 = sshll.u32 %s195_s9, 4  ;;  %p124_p0 = scmp.ne.s32.totalorder %s260_s0, %s123_s13  ;;  %s22_s10 = int_to_ptr.vmem [resolvable:$true] %s21_s10 }
   0x4   :  { %p127_p1 = scmp.lt.u32.totalorder %s123_s13, %s260_s0 }
   0x6   :  { %p129_p2 = pnand %p127_p1, %p124_p0 }
   0x8   :  { %132 = shalt.err (!%p129_p2)
}
   0x9   :  { %s133_s18 = scalar_lea.vmem %s22_s10, 256  ;;  %p138_p4 = scmp.lt.s32.totalorder %s22_s10, %s22_s10 }
   0xa   :  { %p134_p3 = scmp.ne.s32.totalorder %s22_s10, %s133_s18  ;;  %p139_p5 = scmp.lt.s32.totalorder %s133_s18, %s133_s18 }
   0xc   :  { %p140_p6 = por %p139_p5, %p138_p4 }
   0xe   :  { %p141_p7 = pnand %p140_p6, %p134_p3 }
  0x10   :  { %144 = shalt.err (!%p141_p7)
}
  0x11   :  { %s196_s19 = smov 128   ;;  %s197_s20 = smov 8  }
  0x12   :  { %27 = dma.hbm_to_vmem [thread:$0]  %s260_s0, 256, %s22_s10, [#allocation6], %s196_s19, %s196_s19, %s197_s20  }
  0x13   :  { %s198_s23 = smov [#allocation8]   ;;  %s145_s27 = scalar_lea.hbm %s261_s1, 256 }
  0x14   :  { %s39_s24 = sshll.u32 %s198_s23, 4  ;;  %p146_p8 = scmp.ne.s32.totalorder %s261_s1, %s145_s27  ;;  %s40_s24 = int_to_ptr.vmem [resolvable:$true] %s39_s24 }
  0x15   :  { %p149_p9 = scmp.lt.u32.totalorder %s145_s27, %s261_s1 }
  0x17   :  { %p151_p10 = pnand %p149_p9, %p146_p8 }
  0x19   :  { %154 = shalt.err (!%p151_p10)
}
  0x1a   :  { %s155_s4 = scalar_lea.vmem %s40_s24, 256  ;;  %p160_p12 = scmp.lt.s32.totalorder %s40_s24, %s40_s24 }
  0x1b   :  { %p156_p11 = scmp.ne.s32.totalorder %s40_s24, %s155_s4  ;;  %p161_p13 = scmp.lt.s32.totalorder %s155_s4, %s155_s4 }
  0x1d   :  { %p162_p0 = por %p161_p13, %p160_p12 }
  0x1f   :  { %p163_p1 = pnand %p162_p0, %p156_p11 }
  0x21   :  { %166 = shalt.err (!%p163_p1)
}
  0x22   :  { %45 = dma.hbm_to_vmem [thread:$0]  %s261_s1, 256, %s40_s24, [#allocation9], %s196_s19, %s196_s19, %s197_s20  }
  0x23   :  { %189 = dma.done.wait [#allocation6], 256  }
  0x24   :  { %190 = vsyncadd [#allocation6], 4294967040 }
  0x25   :  { %191 = dma.done.wait [#allocation9], 256  }
  0x26   :  { %192 = vsyncadd [#allocation9], 4294967040  ;;  %v67_v0 = vld [vmem:[#allocation5] sm:$0xff]  ;;  %v68_v1 = vld [vmem:[#allocation5 + $0x8] sm:$0xff]  ;;  %s199_s6 = smov [#allocation10]  }
  0x27   :  { %v69_v2 = vld [vmem:[#allocation8] sm:$0xff]  ;;  %v70_v3 = vld [vmem:[#allocation8 + $0x8] sm:$0xff]  ;;  %v78_v5 = vadd.f32 %v68_v1, %v67_v0  ;;  %s101_s7 = sshll.u32 %s199_s6, 4  ;;  %s102_s7 = int_to_ptr.vmem [resolvable:$true] %s101_s7 }
  0x28   :  { %v72_v4 = vmul.f32 %v69_v2, %v67_v0  ;;  %v73_v6 = vmul.f32 %v70_v3, %v68_v1  ;;  %v82_v7 = vadd.f32 %v70_v3, %v69_v2  ;;  %s167_s1 = scalar_lea.vmem %s102_s7, 384  ;;  %p172_p3 = scmp.lt.s32.totalorder %s102_s7, %s102_s7 }
  0x29   :  { %92 = vst [vmem:[#allocation10 + $0x8] sm:$0xff] %v78_v5  ;;  %p168_p2 = scmp.ne.s32.totalorder %s102_s7, %s167_s1  ;;  %p173_p4 = scmp.lt.s32.totalorder %s167_s1, %s167_s1 }
  0x2a   :  { %v74_v8 = vadd.f32 %v73_v6, %v72_v4  ;;  %95 = vst [vmem:[#allocation10 + $0x10] sm:$0xff] %v82_v7 }
  0x2b   :  { %p174_p5 = por %p173_p4, %p172_p3 }
  0x2c   :  { %89 = vst [vmem:[#allocation10] sm:$0xff] %v74_v8 }
  0x2d   :  { %p175_p6 = pnand %p174_p5, %p168_p2 }
  0x2f   :  { %178 = shalt.err (!%p175_p6)
}
  0x30   :  { %s179_s10 = scalar_lea.hbm %s262_s2, 384 }
  0x31   :  { %p180_p7 = scmp.ne.s32.totalorder %s262_s2, %s179_s10  ;;  %p183_p8 = scmp.lt.u32.totalorder %s179_s10, %s262_s2 }
  0x33   :  { %p185_p9 = pnand %p183_p8, %p180_p7 }
  0x35   :  { %188 = shalt.err (!%p185_p9)
}
  0x36   :  { %107 = dma.vmem_to_hbm [thread:$0]  %s102_s7, 384, %s262_s2, [#allocation7], %s196_s19, %s196_s19, %s197_s20  }
  0x37   :  { %193 = dma.done.wait [#allocation7], 384  }
  0x38   :  { %194 = vsyncadd [#allocation7], 4294966912 }
  0x39   :  { %111 = vsyncpa [#allocation6], 1 }
  0x3a   :  { %112 = vsyncpa [#allocation9], 1 }
  0x3b   :  { %113 = vsyncpa [#allocation7], 1 }

</bundles_post_ra>
